<compile_context>
chip_gen: v7x
topology: tpu7x:2x2x1
jax: 0.10.0
libtpu: 0.0.40
codegen_flags: <defaults>
</compile_context>

<pallas_src>
import functools

import jax
import jax.numpy as jnp
from jax.experimental import pallas as pl
from jax.experimental.pallas import tpu as pltpu

LANES = 128
SUBLANES = 8


def _round_up(a, b):
    return ((a + b - 1) // b) * b


def _sublane_align(dtype):
    """Packed-tile minimum sublane multiple: 8 (32-bit), 16 (bf16), 32 (8-bit)."""
    itemsize = jnp.dtype(dtype).itemsize
    return SUBLANES * max(1, 4 // itemsize)


def _chip_tuning():
    """(num_core_splits, max_row_tile) chosen from the device kind."""
    kind = ""
    try:
        kind = jax.devices()[0].device_kind.lower()
    except Exception:
        pass
    if "v7" in kind:
        # TODO(synk): verify plain "parallel" shards the leading axis across the
        # two v7x TensorCores; if not, switch to pltpu.CORE_PARALLEL / core_map.
        return 2, 4096
    if "v4" in kind or "v5p" in kind:
        return 2, 2048          # megacore: 2 TCs behind one device
    return 1, 2048              # v5e / v6e: single TensorCore


def _wmse_kernel(x_ref, t_ref, w_ref, o_ref, *, nrows, full_tiles,
                 tiles_per_split, mask_needed):
    c = pl.program_id(0)             # core-split index ("parallel")
    i = pl.program_id(1)             # tile index within the split ("arbitrary")
    tile = c * tiles_per_split + i   # logical (unclamped) row-tile index

    @pl.when(i == 0)
    def _():
        o_ref[...] = jnp.zeros_like(o_ref)

    row_tile = x_ref.shape[0]
    groups = row_tile // SUBLANES

    # Pure elementwise hot path (VPU); no per-step cross-lane reduce.
    x = x_ref[...].astype(jnp.float32)
    t = t_ref[...].astype(jnp.float32)
    w = w_ref[...].astype(jnp.float32)
    d = x - t
    prod = w * d * d

    def _fold(v):
        # (row_tile,128) -> (8,128): vreg-wise add tree; single RMW on o_ref.
        return jnp.sum(v.reshape(groups, SUBLANES, LANES), axis=0)

    if mask_needed:
        @pl.when(tile < full_tiles)          # fully valid tile: fast path
        def _():
            o_ref[...] += _fold(prod)

        @pl.when(tile >= full_tiles)         # partial / duplicate tile: mask rows
        def _():
            rid = tile * row_tile + jax.lax.broadcasted_iota(
                jnp.int32, prod.shape, 0)
            o_ref[...] += _fold(jnp.where(rid < nrows, prod, 0.0))
    else:
        o_ref[...] += _fold(prod)


def weighted_mse_loss(inp, target, weight):
    """Pallas TPU implementation of torch.mean(weight * (input - target)**2)."""
    assert inp.shape == target.shape == weight.shape
    n = inp.size
    if n == 0:
        return jnp.float32(jnp.nan)          # matches torch.mean on empty

    num_splits, max_row_tile = _chip_tuning()

    bulk_rows = n // LANES
    bulk_n = bulk_rows * LANES

    flats = [a.reshape(-1) for a in (inp, target, weight)]

    # Ragged tail (< 128 elements): trivial jnp epilogue — never pad the bulk.
    tail_sum = jnp.float32(0.0)
    if bulk_n != n:
        xt, tt, wt = (f[bulk_n:].astype(jnp.float32) for f in flats)
        dtail = xt - tt
        tail_sum = jnp.sum(wt * dtail * dtail)

    if bulk_rows == 0:
        return tail_sum / n

    align = max(_sublane_align(a.dtype) for a in (inp, target, weight))
    row_tile = min(max_row_tile, _round_up(bulk_rows, align))
    num_tiles = pl.cdiv(bulk_rows, row_tile)
    num_splits = max(1, min(num_splits, num_tiles))
    tiles_per_split = pl.cdiv(num_tiles, num_splits)

    full_tiles = bulk_rows // row_tile                        # fully valid tiles
    mask_needed = full_tiles != num_splits * tiles_per_split

    def slab(f):
        bulk = f if bulk_n == f.shape[0] else f[:bulk_n]
        return bulk.reshape(bulk_rows, LANES)

    x2, t2, w2 = (slab(f) for f in flats)

    last_tile = num_tiles - 1

    def in_map(c, i):
        t = c * tiles_per_split + i
        if num_splits * tiles_per_split != num_tiles:
            # Duplicate (fully masked) grid steps re-read the last valid block,
            # so no DMA ever goes out of bounds.
            t = jnp.minimum(t, last_tile)
        return (t, 0)

    kernel = functools.partial(
        _wmse_kernel,
        nrows=bulk_rows,
        full_tiles=full_tiles,
        tiles_per_split=tiles_per_split,
        mask_needed=mask_needed,
    )

    in_spec = pl.BlockSpec((row_tile, LANES), in_map)

    partials = pl.pallas_call(
        kernel,
        out_shape=jax.ShapeDtypeStruct((num_splits * SUBLANES, LANES),
                                       jnp.float32),
        grid_spec=pltpu.PrefetchScalarGridSpec(
            num_scalar_prefetch=0,
            grid=(num_splits, tiles_per_split),
            in_specs=[in_spec, in_spec, in_spec],
            out_specs=pl.BlockSpec((SUBLANES, LANES), lambda c, i: (c, 0)),
        ),
        compiler_params=pltpu.CompilerParams(
            dimension_semantics=("parallel", "arbitrary"),
        ),
    )(x2, t2, w2)

    return (jnp.sum(partials) + tail_sum) / n


if __name__ == "__main__":
    key = jax.random.PRNGKey(0)

    def ref_loss(x, t, w):
        xf, tf, wf = (a.astype(jnp.float32) for a in (x, t, w))
        return jnp.mean(wf * (xf - tf) ** 2)

    # 1) lane-aligned f32 case (NCHW-like small example)
    k1, k2, k3, key = jax.random.split(key, 4)
    shape = (2, 4, 16, 16)
    x = jax.random.normal(k1, shape, dtype=jnp.float32)
    t = jax.random.normal(k2, shape, dtype=jnp.float32)
    w = jax.random.uniform(k3, shape, dtype=jnp.float32)
    out = jax.block_until_ready(weighted_mse_loss(x, t, w))
    assert jnp.allclose(out, ref_loss(x, t, w), rtol=1e-5, atol=1e-6), out

    # 2) ragged / unaligned case (exercises masked last tile + jnp tail path)
    k1, k2, k3, key = jax.random.split(key, 4)
    shape = (3, 5, 7, 11)
    x = jax.random.normal(k1, shape, dtype=jnp.float32)
    t = jax.random.normal(k2, shape, dtype=jnp.float32)
    w = jax.random.uniform(k3, shape, dtype=jnp.float32)
    out = jax.block_until_ready(weighted_mse_loss(x, t, w))
    assert jnp.allclose(out, ref_loss(x, t, w), rtol=1e-5, atol=1e-6), out

    # 3) bf16 inputs (exercises dtype-aware alignment / native-dtype streaming)
    k1, k2, k3, key = jax.random.split(key, 4)
    shape = (2, 4, 16, 16)
    x = jax.random.normal(k1, shape, dtype=jnp.bfloat16)
    t = jax.random.normal(k2, shape, dtype=jnp.bfloat16)
    w = jax.random.uniform(k3, shape, dtype=jnp.bfloat16)
    out = jax.block_until_ready(weighted_mse_loss(x, t, w))
    assert jnp.allclose(out, ref_loss(x, t, w), rtol=1e-3, atol=1e-5), out

    print("KERNEL_OK")
</pallas_src>

<mosaic_0001>
module attributes {stable_mosaic.version = 11 : i64} {
  func.func @_wmse_kernel(%arg0: i32, %arg1: i32, %arg2: memref<16x128xf32, #tpu.memory_space<vmem>>, %arg3: memref<16x128xf32, #tpu.memory_space<vmem>>, %arg4: memref<16x128xf32, #tpu.memory_space<vmem>>, %arg5: memref<8x128xf32, #tpu.memory_space<vmem>>) attributes {dimension_semantics = [#tpu.dimension_semantics<parallel>, #tpu.dimension_semantics<arbitrary>], iteration_bounds = array<i64: 1, 1>, scalar_prefetch = 0 : i64, scratch_operands = 0 : i64, tpu.core_type = #tpu.core_type<tc>, window_params = [{transform_indices = @transform_0, window_bounds = array<i64: 16, 128>}, {transform_indices = @transform_1, window_bounds = array<i64: 16, 128>}, {transform_indices = @transform_2, window_bounds = array<i64: 16, 128>}, {transform_indices = @transform_3, window_bounds = array<i64: 8, 128>}]} {
    %c0_i32 = arith.constant 0 : i32
    %0 = arith.cmpi eq, %arg1, %c0_i32 : i32
    %1 = arith.extui %0 : i1 to i32
    %c0_i32_0 = arith.constant 0 : i32
    %2 = arith.cmpi ne, %1, %c0_i32_0 : i32
    scf.if %2 {
      %cst_10 = arith.constant 0.000000e+00 : f32
      %14 = vector.broadcast %cst_10 : f32 to vector<8x128xf32>
      %c0_11 = arith.constant 0 : index
      %c0_12 = arith.constant 0 : index
      %15 = vector.load %arg5[%c0_11, %c0_12] : memref<8x128xf32, #tpu.memory_space<vmem>>, vector<8x128xf32>
      tpu.vector_store %arg5[%c0_11, %c0_12], %14 {strides = array<i32>} : memref<8x128xf32, #tpu.memory_space<vmem>>, vector<8x128xf32>,
    } else {
    }
    %c0 = arith.constant 0 : index
    %c0_1 = arith.constant 0 : index
    %3 = vector.load %arg2[%c0, %c0_1] : memref<16x128xf32, #tpu.memory_space<vmem>>, vector<16x128xf32>
    %c0_2 = arith.constant 0 : index
    %c0_3 = arith.constant 0 : index
    %4 = vector.load %arg3[%c0_2, %c0_3] : memref<16x128xf32, #tpu.memory_space<vmem>>, vector<16x128xf32>
    %c0_4 = arith.constant 0 : index
    %c0_5 = arith.constant 0 : index
    %5 = vector.load %arg4[%c0_4, %c0_5] : memref<16x128xf32, #tpu.memory_space<vmem>>, vector<16x128xf32>
    %6 = arith.subf %3, %4 : vector<16x128xf32>
    %7 = arith.mulf %5, %6 : vector<16x128xf32>
    %8 = arith.mulf %7, %6 : vector<16x128xf32>
    %c0_6 = arith.constant 0 : index
    %c0_7 = arith.constant 0 : index
    %9 = vector.load %arg5[%c0_6, %c0_7] : memref<8x128xf32, #tpu.memory_space<vmem>>, vector<8x128xf32>
    %10 = vector.shape_cast %8 : vector<16x128xf32> to vector<2x8x128xf32>
    %cst = arith.constant dense<0.000000e+00> : vector<8x128xf32>
    %11 = vector.multi_reduction <add>, %10, %cst [0] : vector<2x8x128xf32> to vector<8x128xf32>
    %12 = arith.addf %9, %11 : vector<8x128xf32>
    %c0_8 = arith.constant 0 : index
    %c0_9 = arith.constant 0 : index
    %13 = vector.load %arg5[%c0_8, %c0_9] : memref<8x128xf32, #tpu.memory_space<vmem>>, vector<8x128xf32>
    tpu.vector_store %arg5[%c0_8, %c0_9], %12 {strides = array<i32>} : memref<8x128xf32, #tpu.memory_space<vmem>>, vector<8x128xf32>,
    return
  }
  func.func @transform_0(%arg0: i32, %arg1: i32) -> (i32, i32) {
    %c1_i32 = arith.constant 1 : i32
    %0 = arith.muli %arg0, %c1_i32 : i32
    %1 = arith.addi %0, %arg1 : i32
    %c0_i32 = arith.constant 0 : i32
    %c0_i32_0 = arith.constant 0 : i32
    return %1, %c0_i32 : i32, i32
  }
  func.func @transform_1(%arg0: i32, %arg1: i32) -> (i32, i32) {
    %c1_i32 = arith.constant 1 : i32
    %0 = arith.muli %arg0, %c1_i32 : i32
    %1 = arith.addi %0, %arg1 : i32
    %c0_i32 = arith.constant 0 : i32
    %c0_i32_0 = arith.constant 0 : i32
    return %1, %c0_i32 : i32, i32
  }
  func.func @transform_2(%arg0: i32, %arg1: i32) -> (i32, i32) {
    %c1_i32 = arith.constant 1 : i32
    %0 = arith.muli %arg0, %c1_i32 : i32
    %1 = arith.addi %0, %arg1 : i32
    %c0_i32 = arith.constant 0 : i32
    %c0_i32_0 = arith.constant 0 : i32
    return %1, %c0_i32 : i32, i32
  }
  func.func @transform_3(%arg0: i32, %arg1: i32) -> (i32, i32) {
    %c0_i32 = arith.constant 0 : i32
    %c0_i32_0 = arith.constant 0 : i32
    return %arg0, %c0_i32 : i32, i32
  }
}

</mosaic_0001>

<bundles_post_ra>
// kernel: tpu_custom_call.1
= control target key start
LH: loop header
LB: loop body
LE: loop exit
PB: predicated region body
PF: predicated region fallthrough
CT: control target
= control target key end

     0   :  { %8 = vsyncpa [#allocation3], 0  ;;  %s302_s0 = inlined_call_operand.hbm [shape: f32[16,128], index: 0, kind: input, shape index: {}]   ;;  %s303_s1 = inlined_call_operand.hbm [shape: f32[16,128], index: 1, kind: input, shape index: {}]   ;;  %s304_s2 = inlined_call_operand.hbm [shape: f32[16,128], index: 2, kind: input, shape index: {}]   ;;  %s305_s3 = inlined_call_operand.hbm [shape: f32[8,128], index: 3, kind: output, shape index: {}]  }
   0x1   :  { %9 = vsyncpa [#allocation6], 0 }
   0x2   :  { %10 = vsyncpa [#allocation4], 0  ;;  %s212_s12 = smov [#allocation5]   ;;  %s213_s14 = smov [#allocation2]  }
   0x3   :  { %s36_s13 = sshll.u32 %s212_s12, 4  ;;  %s20_s15 = sshll.u32 %s213_s14, 4  ;;  %s37_s13 = int_to_ptr.vmem [resolvable:$true] %s36_s13  ;;  %s238_s15 = int_to_ptr.vmem [resolvable:$true] %s20_s15 }
   0x4   :  { %s118_s18 = scalar_lea.hbm %s303_s1, 256 }
   0x5   :  { %p119_p0 = scmp.ne.s32.totalorder %s303_s1, %s118_s18  ;;  %p122_p1 = scmp.lt.u32.totalorder %s118_s18, %s303_s1 }
   0x7   :  { %p124_p2 = pnand %p122_p1, %p119_p0 }
   0x9   :  { %127 = shalt.err (!%p124_p2)
}
   0xa   :  { %s128_s23 = scalar_lea.vmem %s37_s13, 256  ;;  %p133_p4 = scmp.lt.s32.totalorder %s37_s13, %s37_s13 }
   0xb   :  { %p129_p3 = scmp.ne.s32.totalorder %s37_s13, %s128_s23  ;;  %p134_p5 = scmp.lt.s32.totalorder %s128_s23, %s128_s23 }
   0xd   :  { %p135_p6 = por %p134_p5, %p133_p4 }
   0xf   :  { %p136_p7 = pnand %p135_p6, %p129_p3 }
  0x11   :  { %139 = shalt.err (!%p136_p7)
}
  0x12   :  { %s214_s24 = smov 128   ;;  %s215_s25 = smov 8  }
  0x13   :  { %42 = dma.hbm_to_vmem [thread:$0]  %s303_s1, 256, %s37_s13, [#allocation6], %s214_s24, %s214_s24, %s215_s25  }
  0x14   :  { %s140_s30 = scalar_lea.hbm %s302_s0, 256 }
  0x15   :  { %p141_p8 = scmp.ne.s32.totalorder %s302_s0, %s140_s30  ;;  %p144_p9 = scmp.lt.u32.totalorder %s140_s30, %s302_s0 }
  0x17   :  { %p146_p10 = pnand %p144_p9, %p141_p8 }
  0x19   :  { %149 = shalt.err (!%p146_p10)
}
  0x1a   :  { %s150_s8 = scalar_lea.vmem %s238_s15, 256  ;;  %p155_p12 = scmp.lt.s32.totalorder %s238_s15, %s238_s15 }
  0x1b   :  { %p151_p11 = scmp.ne.s32.totalorder %s238_s15, %s150_s8  ;;  %p156_p13 = scmp.lt.s32.totalorder %s150_s8, %s150_s8 }
  0x1d   :  { %p157_p0 = por %p156_p13, %p155_p12 }
  0x1f   :  { %p158_p1 = pnand %p157_p0, %p151_p11 }
  0x21   :  { %161 = shalt.err (!%p158_p1)
}
  0x22   :  { %26 = dma.hbm_to_vmem [thread:$0]  %s302_s0, 256, %s238_s15, [#allocation3], %s214_s24, %s214_s24, %s215_s25  }
  0x23   :  { %s216_s10 = smov [#allocation7]   ;;  %s162_s14 = scalar_lea.hbm %s304_s2, 256 }
  0x24   :  { %s52_s11 = sshll.u32 %s216_s10, 4  ;;  %p163_p2 = scmp.ne.s32.totalorder %s304_s2, %s162_s14  ;;  %s53_s11 = int_to_ptr.vmem [resolvable:$true] %s52_s11 }
  0x25   :  { %p166_p3 = scmp.lt.u32.totalorder %s162_s14, %s304_s2 }
  0x27   :  { %p168_p4 = pnand %p166_p3, %p163_p2 }
  0x29   :  { %171 = shalt.err (!%p168_p4)
}
  0x2a   :  { %s172_s20 = scalar_lea.vmem %s53_s11, 256  ;;  %p177_p6 = scmp.lt.s32.totalorder %s53_s11, %s53_s11 }
  0x2b   :  { %p173_p5 = scmp.ne.s32.totalorder %s53_s11, %s172_s20  ;;  %p178_p7 = scmp.lt.s32.totalorder %s172_s20, %s172_s20 }
  0x2d   :  { %p179_p8 = por %p178_p7, %p177_p6 }
  0x2f   :  { %p180_p9 = pnand %p179_p8, %p173_p5 }
  0x31   :  { %183 = shalt.err (!%p180_p9)
}
  0x32   :  { %58 = dma.hbm_to_vmem [thread:$0]  %s304_s2, 256, %s53_s11, [#allocation6], %s214_s24, %s214_s24, %s215_s25  }
  0x33   :  { %206 = dma.done.wait [#allocation3], 256  }
  0x34   :  { %207 = vsyncadd [#allocation3], 4294967040 }
  0x35   :  { %208 = dma.done.wait [#allocation6], 512  }
  0x36   :  { %209 = vsyncadd [#allocation6], 4294966784  ;;  %v79_v0 = vld [vmem:[#allocation2] sm:$0xff]  ;;  %v80_v1 = vld [vmem:[#allocation2 + $0x8] sm:$0xff]  ;;  %s217_s21 = smov [#allocation8]  }
  0x37   :  { %v81_v2 = vld [vmem:[#allocation5] sm:$0xff]  ;;  %v82_v3 = vld [vmem:[#allocation5 + $0x8] sm:$0xff]  ;;  %v83_v4 = vld [vmem:[#allocation7] sm:$0xff]  ;;  %s101_s22 = sshll.u32 %s217_s21, 4  ;;  %s102_s22 = int_to_ptr.vmem [resolvable:$true] %s101_s22 }
  0x38   :  { %v84_v5 = vld [vmem:[#allocation7 + $0x8] sm:$0xff]  ;;  %v85_v6 = vsub.f32 %v79_v0, %v81_v2  ;;  %v86_v7 = vsub.f32 %v80_v1, %v82_v3  ;;  %s184_s2 = scalar_lea.vmem %s102_s22, 128  ;;  %p189_p11 = scmp.lt.s32.totalorder %s102_s22, %s102_s22 }
  0x39   :  { %p185_p10 = scmp.ne.s32.totalorder %s102_s22, %s184_s2  ;;  %p190_p12 = scmp.lt.s32.totalorder %s184_s2, %s184_s2 }
  0x3a   :  { %v87_v8 = vmul.f32 %v85_v6, %v83_v4  ;;  %v88_v9 = vmul.f32 %v86_v7, %v84_v5 }
  0x3b   :  { %p191_p13 = por %p190_p12, %p189_p11 }
  0x3c   :  { %v89_v10 = vmul.f32 %v87_v8, %v85_v6  ;;  %v90_v11 = vmul.f32 %v88_v9, %v86_v7 }
  0x3d   :  { %p192_p0 = pnand %p191_p13, %p185_p10 }
  0x3e   :  { %v92_v12 = vadd.f32 %v90_v11, %v89_v10 }
  0x40   :  { %94 = vst [vmem:[#allocation8] sm:$0xff] %v92_v12 }
  0x41   :  { %195 = shalt.err (!%p192_p0)
}
  0x42   :  { %s196_s25 = scalar_lea.hbm %s305_s3, 128 }
  0x43   :  { %p197_p1 = scmp.ne.s32.totalorder %s305_s3, %s196_s25  ;;  %p200_p2 = scmp.lt.u32.totalorder %s196_s25, %s305_s3 }
  0x45   :  { %p202_p3 = pnand %p200_p2, %p197_p1 }
  0x47   :  { %205 = shalt.err (!%p202_p3)
}
  0x48   :  { %104 = dma.vmem_to_hbm [thread:$0]  %s102_s22, 128, %s305_s3, [#allocation4]  }
  0x49   :  { %210 = dma.done.wait [#allocation4], 128  }
  0x4a   :  { %211 = vsyncadd [#allocation4], 4294967168 }
  0x4b   :  { %108 = vsyncpa [#allocation3], 1 }
  0x4c   :  { %109 = vsyncpa [#allocation6], 1 }
  0x4d   :  { %110 = vsyncpa [#allocation4], 1 }

</bundles_post_ra>
